<compile_context>
chip_gen: v5e
topology: v5e:2x2
jax: 0.10.0
libtpu: 0.0.40
codegen_flags: <defaults>
</compile_context>

<pallas_src>
import math

import jax
import jax.numpy as jnp
from jax import lax
from jax.experimental import pallas as pl
from jax.experimental.pallas import tpu as pltpu

# --- config (small, deterministic) -----------------------------------------
B = 2          # batch
S = 8          # sequence length
H = 32         # hidden_size
NH = 4         # num_attention_heads
DH = H // NH   # attention_head_size
LN_EPS = 1e-12


def bert_attention_kernel(x_ref, mask_ref, wqkv_ref, bqkv_ref, wo_ref, obg_ref,
                          out_ref):
    """Fused per-batch BertAttention.

    x_ref:    (1, S, H)   f32   hidden states for this batch element
    mask_ref: (1, 1, S)   f32   additive key mask (0 / -10000)
    wqkv_ref: (H, 3H)     bf16  fused [Wq*scale | Wk | Wv]
    bqkv_ref: (1, 3H)     f32   fused [bq*scale | bk | bv]
    wo_ref:   (H, H)      bf16  output projection
    obg_ref:  (3, H)      f32   rows = [b_o, ln_gamma, ln_beta]
    out_ref:  (1, S, H)   f32
    """
    x = x_ref[0]                                     # (S, H) f32, kept for residual
    x_bf = x.astype(jnp.bfloat16)

    # ---- fused QKV projection: one K=H, N=3H MXU pass (scale folded into Q) -
    qkv = jnp.dot(x_bf, wqkv_ref[...],
                  preferred_element_type=jnp.float32)          # (S, 3H) f32
    qkv = qkv + bqkv_ref[...]                                  # (1, 3H) broadcast

    # ---- head split: static lane slices + stack along a new leading dim -----
    def heads(lo):
        return jnp.stack(
            [qkv[:, lo + h * DH: lo + (h + 1) * DH] for h in range(NH)],
            axis=0).astype(jnp.bfloat16)                       # (NH, S, DH)

    q = heads(0)
    k = heads(H)
    v = heads(2 * H)

    # ---- scaled dot-product attention, heads batched on the leading dim -----
    scores = jnp.einsum('hqd,hkd->hqk', q, k,
                        preferred_element_type=jnp.float32)    # (NH, S, S) f32
    scores = scores + mask_ref[0]                              # (1, S) key mask

    scores = scores - jnp.max(scores, axis=-1, keepdims=True)  # f32 softmax
    e = jnp.exp(scores)
    probs = e * pl.reciprocal(jnp.sum(e, axis=-1, keepdims=True), approx=True)

    ctx = jnp.einsum('hqk,hkd->hqd', probs.astype(jnp.bfloat16), v,
                     preferred_element_type=jnp.float32)       # (NH, S, DH)

    # ---- BertSelfOutput: merge heads, single K=H output proj, residual, LN --
    ctx_flat = jnp.concatenate([ctx[h] for h in range(NH)], axis=-1)  # (S, H)
    y = jnp.dot(ctx_flat.astype(jnp.bfloat16), wo_ref[...],
                preferred_element_type=jnp.float32)            # (S, H) f32

    obg = obg_ref[...]                                         # (3, H)
    y = y + obg[0:1, :] + x                                    # bias + residual

    mean = jnp.mean(y, axis=-1, keepdims=True)
    yc = y - mean
    var = jnp.mean(yc * yc, axis=-1, keepdims=True)
    out = yc * lax.rsqrt(var + LN_EPS) * obg[1:2, :] + obg[2:3, :]

    out_ref[0] = out.astype(out_ref.dtype)


# --- wrapper ---------------------------------------------------------------

def _prepare_params(params):
    (wq, bq, wk, bk, wv, bv, wo, bo, gamma, beta) = params
    scale = 1.0 / math.sqrt(DH)
    # Fold the attention scale into the Q projection (one-time weight transform).
    wqkv = jnp.concatenate([wq * scale, wk, wv], axis=-1).astype(jnp.bfloat16)  # (H, 3H)
    bqkv = jnp.concatenate([bq * scale, bk, bv], axis=-1).astype(jnp.float32)   # (1, 3H)
    wo_bf = wo.astype(jnp.bfloat16)                                             # (H, H)
    obg = jnp.concatenate([bo, gamma, beta], axis=0).astype(jnp.float32)        # (3, H)
    return wqkv, bqkv, wo_bf, obg


@jax.jit
def bert_attention(x, attn_mask_add, params):
    """x: (B, S, H) f32; attn_mask_add: (B, 1, S) additive key mask (0 / -10000)."""
    wqkv, bqkv, wo_bf, obg = _prepare_params(params)

    # TODO(synk): at production S (>=512), tile the kv axis with a flash-style
    # online softmax and set vmem_limit_bytes per generation (16/32/64 MiB).
    return pl.pallas_call(
        bert_attention_kernel,
        out_shape=jax.ShapeDtypeStruct((B, S, H), x.dtype),
        grid=(B,),
        in_specs=[
            pl.BlockSpec((1, S, H), lambda b: (b, 0, 0)),      # x, per batch
            pl.BlockSpec((1, 1, S), lambda b: (b, 0, 0)),      # key mask, per batch
            pl.BlockSpec((H, 3 * H), lambda b: (0, 0)),        # fused QKV weight
            pl.BlockSpec((1, 3 * H), lambda b: (0, 0)),        # fused QKV bias
            pl.BlockSpec((H, H), lambda b: (0, 0)),            # output proj weight
            pl.BlockSpec((3, H), lambda b: (0, 0)),            # [b_o, gamma, beta]
        ],
        out_specs=pl.BlockSpec((1, S, H), lambda b: (b, 0, 0)),
        compiler_params=pltpu.CompilerParams(
            dimension_semantics=("parallel",)),                # 2nd TC on v7x
    )(x, attn_mask_add.astype(jnp.float32), wqkv, bqkv, wo_bf, obg)


# --- pure-JAX f32 reference (PyTorch forward semantics, eval mode) -----------

def reference_bert_attention(x, attn_mask_add, params):
    (wq, bq, wk, bk, wv, bv, wo, bo, gamma, beta) = params
    q = x @ wq + bq
    k = x @ wk + bk
    v = x @ wv + bv

    def split(t):  # (B,S,H) -> (B,NH,S,DH)
        return t.reshape(B, S, NH, DH).transpose(0, 2, 1, 3)

    qh, kh, vh = split(q), split(k), split(v)
    scores = jnp.einsum('bhqd,bhkd->bhqk', qh, kh) / math.sqrt(DH)
    scores = scores + attn_mask_add[:, None, :, :]        # (B,1,1,S) broadcast
    probs = jax.nn.softmax(scores, axis=-1)
    ctx = jnp.einsum('bhqk,bhkd->bhqd', probs, vh)
    ctx = ctx.transpose(0, 2, 1, 3).reshape(B, S, H)

    y = ctx @ wo + bo + x
    mean = y.mean(-1, keepdims=True)
    var = ((y - mean) ** 2).mean(-1, keepdims=True)
    return (y - mean) / jnp.sqrt(var + LN_EPS) * gamma + beta


def init_params(key):
    keys = jax.random.split(key, 8)
    scale = 1.0 / math.sqrt(H)
    # weights stored (in_features, out_features) — i.e. PyTorch W.T
    wq = jax.random.normal(keys[0], (H, H), jnp.float32) * scale
    wk = jax.random.normal(keys[1], (H, H), jnp.float32) * scale
    wv = jax.random.normal(keys[2], (H, H), jnp.float32) * scale
    wo = jax.random.normal(keys[3], (H, H), jnp.float32) * scale
    bq = jax.random.normal(keys[4], (1, H), jnp.float32) * 0.02
    bk = jax.random.normal(keys[5], (1, H), jnp.float32) * 0.02
    bv = jax.random.normal(keys[6], (1, H), jnp.float32) * 0.02
    bo = jax.random.normal(keys[7], (1, H), jnp.float32) * 0.02
    gamma = jnp.ones((1, H), jnp.float32)
    beta = jnp.zeros((1, H), jnp.float32)
    return (wq, bq, wk, bk, wv, bv, wo, bo, gamma, beta)


if __name__ == "__main__":
    key = jax.random.PRNGKey(0)
    k_x, k_p = jax.random.split(key, 2)

    x = jax.random.normal(k_x, (B, S, H), jnp.float32)

    # BERT-style additive key mask: last 2 tokens of batch 1 are padding.
    valid = jnp.ones((B, S), jnp.float32).at[1, S - 2:].set(0.0)
    attn_mask_add = ((1.0 - valid) * -10000.0)[:, None, :]   # (B, 1, S)

    params = init_params(k_p)

    out = jax.block_until_ready(bert_attention(x, attn_mask_add, params))
    ref = reference_bert_attention(x, attn_mask_add, params)

    assert out.shape == (B, S, H)
    err = float(jnp.max(jnp.abs(out - ref)))
    # bf16 MXU operands + approx reciprocal vs a pure-f32 reference.
    assert err < 5e-2, f"max abs err {err}"
    print("KERNEL_OK")
</pallas_src>

<mosaic_0001>
module attributes {stable_mosaic.version = 11 : i64} {
  func.func @bert_attention_kernel(%arg0: i32, %arg1: memref<1x8x32xf32, #tpu.memory_space<vmem>>, %arg2: memref<1x1x8xf32, #tpu.memory_space<vmem>>, %arg3: memref<32x96xbf16, #tpu.memory_space<vmem>>, %arg4: memref<1x96xf32, #tpu.memory_space<vmem>>, %arg5: memref<32x32xbf16, #tpu.memory_space<vmem>>, %arg6: memref<3x32xf32, #tpu.memory_space<vmem>>, %arg7: memref<1x8x32xf32, #tpu.memory_space<vmem>>) attributes {dimension_semantics = [#tpu.dimension_semantics<parallel>], iteration_bounds = array<i64: 2>, scalar_prefetch = 0 : i64, scratch_operands = 0 : i64, tpu.core_type = #tpu.core_type<tc>, window_params = [{transform_indices = @transform_0, window_bounds = array<i64: 1, 8, 32>}, {transform_indices = @transform_1, window_bounds = array<i64: 1, 1, 8>}, {pipeline_mode = #tpu.pipeline_mode<synchronous>, transform_indices = @transform_2, window_bounds = array<i64: 32, 96>}, {pipeline_mode = #tpu.pipeline_mode<synchronous>, transform_indices = @transform_3, window_bounds = array<i64: 1, 96>}, {pipeline_mode = #tpu.pipeline_mode<synchronous>, transform_indices = @transform_4, window_bounds = array<i64: 32, 32>}, {pipeline_mode = #tpu.pipeline_mode<synchronous>, transform_indices = @transform_5, window_bounds = array<i64: 3, 32>}, {transform_indices = @transform_6, window_bounds = array<i64: 1, 8, 32>}]} {
    %c0 = arith.constant 0 : index
    %c0_0 = arith.constant 0 : index
    %c0_1 = arith.constant 0 : index
    %0 = vector.load %arg1[%c0, %c0_0, %c0_1] : memref<1x8x32xf32, #tpu.memory_space<vmem>>, vector<1x8x32xf32>
    %1 = vector.shape_cast %0 : vector<1x8x32xf32> to vector<8x32xf32>
    %2 = arith.truncf %1 : vector<8x32xf32> to vector<8x32xbf16>
    %c0_2 = arith.constant 0 : index
    %c0_3 = arith.constant 0 : index
    %3 = vector.load %arg3[%c0_2, %c0_3] : memref<32x96xbf16, #tpu.memory_space<vmem>>, vector<32x96xbf16>
    %cst = arith.constant dense<0.000000e+00> : vector<8x96xf32>
    %4 = tpu.matmul %2, %3, %cst {dimension_numbers = #tpu.dot_dimension_numbers<[1], [0], [0], [1], [0, 0, 1, 1], [], []>} : vector<8x32xbf16>, vector<32x96xbf16>, vector<8x96xf32> -> vector<8x96xf32>
    %c0_4 = arith.constant 0 : index
    %c0_5 = arith.constant 0 : index
    %5 = vector.load %arg4[%c0_4, %c0_5] : memref<1x96xf32, #tpu.memory_space<vmem>>, vector<1x96xf32>
    %6 = vector.broadcast %5 : vector<1x96xf32> to vector<8x96xf32>
    %7 = arith.addf %4, %6 : vector<8x96xf32>
    %8 = vector.extract_strided_slice %7 {offsets = [0, 0], sizes = [8, 8], strides = [1, 1]} : vector<8x96xf32> to vector<8x8xf32>
    %9 = vector.extract_strided_slice %7 {offsets = [0, 8], sizes = [8, 8], strides = [1, 1]} : vector<8x96xf32> to vector<8x8xf32>
    %10 = vector.extract_strided_slice %7 {offsets = [0, 16], sizes = [8, 8], strides = [1, 1]} : vector<8x96xf32> to vector<8x8xf32>
    %11 = vector.extract_strided_slice %7 {offsets = [0, 24], sizes = [8, 8], strides = [1, 1]} : vector<8x96xf32> to vector<8x8xf32>
    %12 = vector.shape_cast %8 : vector<8x8xf32> to vector<1x8x8xf32>
    %13 = vector.shape_cast %9 : vector<8x8xf32> to vector<1x8x8xf32>
    %14 = vector.shape_cast %10 : vector<8x8xf32> to vector<1x8x8xf32>
    %15 = vector.shape_cast %11 : vector<8x8xf32> to vector<1x8x8xf32>
    %16 = tpu.concatenate %12, %13, %14, %15 in 0 : vector<1x8x8xf32>, vector<1x8x8xf32>, vector<1x8x8xf32>, vector<1x8x8xf32> -> vector<4x8x8xf32>
    %17 = arith.truncf %16 : vector<4x8x8xf32> to vector<4x8x8xbf16>
    %18 = vector.extract_strided_slice %7 {offsets = [0, 32], sizes = [8, 8], strides = [1, 1]} : vector<8x96xf32> to vector<8x8xf32>
    %19 = vector.extract_strided_slice %7 {offsets = [0, 40], sizes = [8, 8], strides = [1, 1]} : vector<8x96xf32> to vector<8x8xf32>
    %20 = vector.extract_strided_slice %7 {offsets = [0, 48], sizes = [8, 8], strides = [1, 1]} : vector<8x96xf32> to vector<8x8xf32>
    %21 = vector.extract_strided_slice %7 {offsets = [0, 56], sizes = [8, 8], strides = [1, 1]} : vector<8x96xf32> to vector<8x8xf32>
    %22 = vector.shape_cast %18 : vector<8x8xf32> to vector<1x8x8xf32>
    %23 = vector.shape_cast %19 : vector<8x8xf32> to vector<1x8x8xf32>
    %24 = vector.shape_cast %20 : vector<8x8xf32> to vector<1x8x8xf32>
    %25 = vector.shape_cast %21 : vector<8x8xf32> to vector<1x8x8xf32>
    %26 = tpu.concatenate %22, %23, %24, %25 in 0 : vector<1x8x8xf32>, vector<1x8x8xf32>, vector<1x8x8xf32>, vector<1x8x8xf32> -> vector<4x8x8xf32>
    %27 = arith.truncf %26 : vector<4x8x8xf32> to vector<4x8x8xbf16>
    %28 = vector.extract_strided_slice %7 {offsets = [0, 64], sizes = [8, 8], strides = [1, 1]} : vector<8x96xf32> to vector<8x8xf32>
    %29 = vector.extract_strided_slice %7 {offsets = [0, 72], sizes = [8, 8], strides = [1, 1]} : vector<8x96xf32> to vector<8x8xf32>
    %30 = vector.extract_strided_slice %7 {offsets = [0, 80], sizes = [8, 8], strides = [1, 1]} : vector<8x96xf32> to vector<8x8xf32>
    %31 = vector.extract_strided_slice %7 {offsets = [0, 88], sizes = [8, 8], strides = [1, 1]} : vector<8x96xf32> to vector<8x8xf32>
    %32 = vector.shape_cast %28 : vector<8x8xf32> to vector<1x8x8xf32>
    %33 = vector.shape_cast %29 : vector<8x8xf32> to vector<1x8x8xf32>
    %34 = vector.shape_cast %30 : vector<8x8xf32> to vector<1x8x8xf32>
    %35 = vector.shape_cast %31 : vector<8x8xf32> to vector<1x8x8xf32>
    %36 = tpu.concatenate %32, %33, %34, %35 in 0 : vector<1x8x8xf32>, vector<1x8x8xf32>, vector<1x8x8xf32>, vector<1x8x8xf32> -> vector<4x8x8xf32>
    %37 = arith.truncf %36 : vector<4x8x8xf32> to vector<4x8x8xbf16>
    "tpu.trace_start"() <{level = 10 : i32, message = "hqd,hkd->hqk"}> : () -> ()
    %cst_6 = arith.constant dense<0.000000e+00> : vector<4x8x8xf32>
    %38 = tpu.matmul %17, %27, %cst_6 {dimension_numbers = #tpu.dot_dimension_numbers<[2], [2], [1], [1], [0, 0, 0, 1, 1, 1], [0], [0]>} : vector<4x8x8xbf16>, vector<4x8x8xbf16>, vector<4x8x8xf32> -> vector<4x8x8xf32>
    "tpu.trace_stop"() : () -> ()
    %c0_7 = arith.constant 0 : index
    %c0_8 = arith.constant 0 : index
    %c0_9 = arith.constant 0 : index
    %39 = vector.load %arg2[%c0_7, %c0_8, %c0_9] : memref<1x1x8xf32, #tpu.memory_space<vmem>>, vector<1x1x8xf32>
    %40 = vector.shape_cast %39 : vector<1x1x8xf32> to vector<1x8xf32>
    %41 = vector.shape_cast %40 : vector<1x8xf32> to vector<1x1x8xf32>
    %42 = vector.broadcast %41 : vector<1x1x8xf32> to vector<4x8x8xf32>
    %43 = arith.addf %38, %42 : vector<4x8x8xf32>
    %cst_10 = arith.constant dense<0xFF800000> : vector<4x8xf32>
    %44 = vector.multi_reduction <maximumf>, %43, %cst_10 [2] : vector<4x8x8xf32> to vector<4x8xf32>
    %45 = vector.shape_cast %44 : vector<4x8xf32> to vector<4x8x1xf32>
    %46 = vector.broadcast %45 : vector<4x8x1xf32> to vector<4x8x8xf32>
    %47 = arith.subf %43, %46 : vector<4x8x8xf32>
    %48 = math.exp %47 : vector<4x8x8xf32>
    %cst_11 = arith.constant dense<0.000000e+00> : vector<4x8xf32>
    %49 = vector.multi_reduction <add>, %48, %cst_11 [2] : vector<4x8x8xf32> to vector<4x8xf32>
    %50 = vector.shape_cast %49 : vector<4x8xf32> to vector<4x8x1xf32>
    %51 = tpu.reciprocal %50 {approx = true} : vector<4x8x1xf32> -> vector<4x8x1xf32>
    %52 = vector.broadcast %51 : vector<4x8x1xf32> to vector<4x8x8xf32>
    %53 = arith.mulf %48, %52 : vector<4x8x8xf32>
    %54 = arith.truncf %53 : vector<4x8x8xf32> to vector<4x8x8xbf16>
    "tpu.trace_start"() <{level = 10 : i32, message = "hqk,hkd->hqd"}> : () -> ()
    %cst_12 = arith.constant dense<0.000000e+00> : vector<4x8x8xf32>
    %55 = tpu.matmul %54, %37, %cst_12 {dimension_numbers = #tpu.dot_dimension_numbers<[2], [1], [1], [2], [0, 0, 0, 1, 1, 2], [0], [0]>} : vector<4x8x8xbf16>, vector<4x8x8xbf16>, vector<4x8x8xf32> -> vector<4x8x8xf32>
    "tpu.trace_stop"() : () -> ()
    %56 = vector.extract_strided_slice %55 {offsets = [0, 0, 0], sizes = [1, 8, 8], strides = [1, 1, 1]} : vector<4x8x8xf32> to vector<1x8x8xf32>
    %57 = vector.shape_cast %56 : vector<1x8x8xf32> to vector<8x8xf32>
    %58 = vector.extract_strided_slice %55 {offsets = [1, 0, 0], sizes = [1, 8, 8], strides = [1, 1, 1]} : vector<4x8x8xf32> to vector<1x8x8xf32>
    %59 = vector.shape_cast %58 : vector<1x8x8xf32> to vector<8x8xf32>
    %60 = vector.extract_strided_slice %55 {offsets = [2, 0, 0], sizes = [1, 8, 8], strides = [1, 1, 1]} : vector<4x8x8xf32> to vector<1x8x8xf32>
    %61 = vector.shape_cast %60 : vector<1x8x8xf32> to vector<8x8xf32>
    %62 = vector.extract_strided_slice %55 {offsets = [3, 0, 0], sizes = [1, 8, 8], strides = [1, 1, 1]} : vector<4x8x8xf32> to vector<1x8x8xf32>
    %63 = vector.shape_cast %62 : vector<1x8x8xf32> to vector<8x8xf32>
    %64 = tpu.concatenate %57, %59, %61, %63 in 1 : vector<8x8xf32>, vector<8x8xf32>, vector<8x8xf32>, vector<8x8xf32> -> vector<8x32xf32>
    %65 = arith.truncf %64 : vector<8x32xf32> to vector<8x32xbf16>
    %c0_13 = arith.constant 0 : index
    %c0_14 = arith.constant 0 : index
    %66 = vector.load %arg5[%c0_13, %c0_14] : memref<32x32xbf16, #tpu.memory_space<vmem>>, vector<32x32xbf16>
    %cst_15 = arith.constant dense<0.000000e+00> : vector<8x32xf32>
    %67 = tpu.matmul %65, %66, %cst_15 {dimension_numbers = #tpu.dot_dimension_numbers<[1], [0], [0], [1], [0, 0, 1, 1], [], []>} : vector<8x32xbf16>, vector<32x32xbf16>, vector<8x32xf32> -> vector<8x32xf32>
    %c0_16 = arith.constant 0 : index
    %c0_17 = arith.constant 0 : index
    %68 = vector.load %arg6[%c0_16, %c0_17] : memref<3x32xf32, #tpu.memory_space<vmem>>, vector<3x32xf32>
    %69 = vector.extract_strided_slice %68 {offsets = [0, 0], sizes = [1, 32], strides = [1, 1]} : vector<3x32xf32> to vector<1x32xf32>
    %70 = vector.broadcast %69 : vector<1x32xf32> to vector<8x32xf32>
    %71 = arith.addf %67, %70 : vector<8x32xf32>
    %72 = arith.addf %71, %1 : vector<8x32xf32>
    %cst_18 = arith.constant dense<0.000000e+00> : vector<8xf32>
    %73 = vector.multi_reduction <add>, %72, %cst_18 [1] : vector<8x32xf32> to vector<8xf32>
    %74 = vector.shape_cast %73 : vector<8xf32> to vector<8x1xf32>
    %cst_19 = arith.constant 3.200000e+01 : f32
    %75 = vector.broadcast %cst_19 : f32 to vector<8x1xf32>
    %76 = arith.divf %74, %75 : vector<8x1xf32>
    %77 = vector.broadcast %76 : vector<8x1xf32> to vector<8x32xf32>
    %78 = arith.subf %72, %77 : vector<8x32xf32>
    %79 = arith.mulf %78, %78 : vector<8x32xf32>
    %cst_20 = arith.constant dense<0.000000e+00> : vector<8xf32>
    %80 = vector.multi_reduction <add>, %79, %cst_20 [1] : vector<8x32xf32> to vector<8xf32>
    %81 = vector.shape_cast %80 : vector<8xf32> to vector<8x1xf32>
    %cst_21 = arith.constant 3.200000e+01 : f32
    %82 = vector.broadcast %cst_21 : f32 to vector<8x1xf32>
    %83 = arith.divf %81, %82 : vector<8x1xf32>
    %cst_22 = arith.constant 9.99999996E-13 : f32
    %84 = vector.broadcast %cst_22 : f32 to vector<8x1xf32>
    %85 = arith.addf %83, %84 : vector<8x1xf32>
    %86 = math.rsqrt %85 : vector<8x1xf32>
    %87 = vector.broadcast %86 : vector<8x1xf32> to vector<8x32xf32>
    %88 = arith.mulf %78, %87 : vector<8x32xf32>
    %89 = vector.extract_strided_slice %68 {offsets = [1, 0], sizes = [1, 32], strides = [1, 1]} : vector<3x32xf32> to vector<1x32xf32>
    %90 = vector.broadcast %89 : vector<1x32xf32> to vector<8x32xf32>
    %91 = arith.mulf %88, %90 : vector<8x32xf32>
    %92 = vector.extract_strided_slice %68 {offsets = [2, 0], sizes = [1, 32], strides = [1, 1]} : vector<3x32xf32> to vector<1x32xf32>
    %93 = vector.broadcast %92 : vector<1x32xf32> to vector<8x32xf32>
    %94 = arith.addf %91, %93 : vector<8x32xf32>
    %c0_23 = arith.constant 0 : index
    %c0_24 = arith.constant 0 : index
    %c0_25 = arith.constant 0 : index
    %95 = vector.load %arg7[%c0_23, %c0_24, %c0_25] : memref<1x8x32xf32, #tpu.memory_space<vmem>>, vector<1x8x32xf32>
    %96 = vector.shape_cast %95 : vector<1x8x32xf32> to vector<8x32xf32>
    %97 = vector.shape_cast %94 : vector<8x32xf32> to vector<1x8x32xf32>
    tpu.vector_store %arg7[%c0_23, %c0_24, %c0_25], %97 {strides = array<i32>} : memref<1x8x32xf32, #tpu.memory_space<vmem>>, vector<1x8x32xf32>,
    return
  }
  func.func @transform_0(%arg0: i32) -> (i32, i32, i32) {
    %c0_i32 = arith.constant 0 : i32
    %c0_i32_0 = arith.constant 0 : i32
    %c0_i32_1 = arith.constant 0 : i32
    return %arg0, %c0_i32, %c0_i32_0 : i32, i32, i32
  }
  func.func @transform_1(%arg0: i32) -> (i32, i32, i32) {
    %c0_i32 = arith.constant 0 : i32
    %c0_i32_0 = arith.constant 0 : i32
    %c0_i32_1 = arith.constant 0 : i32
    return %arg0, %c0_i32, %c0_i32_0 : i32, i32, i32
  }
  func.func @transform_2(%arg0: i32) -> (i32, i32) {
    %c0_i32 = arith.constant 0 : i32
    %c0_i32_0 = arith.constant 0 : i32
    %c0_i32_1 = arith.constant 0 : i32
    return %c0_i32, %c0_i32_0 : i32, i32
  }
  func.func @transform_3(%arg0: i32) -> (i32, i32) {
    %c0_i32 = arith.constant 0 : i32
    %c0_i32_0 = arith.constant 0 : i32
    %c0_i32_1 = arith.constant 0 : i32
    return %c0_i32, %c0_i32_0 : i32, i32
  }
  func.func @transform_4(%arg0: i32) -> (i32, i32) {
    %c0_i32 = arith.constant 0 : i32
    %c0_i32_0 = arith.constant 0 : i32
    %c0_i32_1 = arith.constant 0 : i32
    return %c0_i32, %c0_i32_0 : i32, i32
  }
  func.func @transform_5(%arg0: i32) -> (i32, i32) {
    %c0_i32 = arith.constant 0 : i32
    %c0_i32_0 = arith.constant 0 : i32
    %c0_i32_1 = arith.constant 0 : i32
    return %c0_i32, %c0_i32_0 : i32, i32
  }
  func.func @transform_6(%arg0: i32) -> (i32, i32, i32) {
    %c0_i32 = arith.constant 0 : i32
    %c0_i32_0 = arith.constant 0 : i32
    %c0_i32_1 = arith.constant 0 : i32
    return %arg0, %c0_i32, %c0_i32_0 : i32, i32, i32
  }
}

</mosaic_0001>

<bundles_post_ra>
// kernel: bert_attention.1
= control target key start
LH: loop header
LB: loop body
LE: loop exit
PB: predicated region body
PF: predicated region fallthrough
CT: control target
= control target key end

     0   :  { %11 = vsyncpa [#allocation3], 0  ;;  %s1100_s0 = inlined_call_operand.vmem [shape: f32[2,8,32], index: 0, kind: input, shape index: {}]   ;;  %s1101_s1 = inlined_call_operand.vmem [shape: f32[2,1,8], index: 1, kind: input, shape index: {}]   ;;  %s1102_s2 = inlined_call_operand.vmem [shape: bf16[32,96], index: 2, kind: input, shape index: {}]   ;;  %s1103_s3 = inlined_call_operand.vmem [shape: f32[1,96], index: 3, kind: input, shape index: {}]   ;;  %s1104_s4 = inlined_call_operand.vmem [shape: bf16[32,32], index: 4, kind: input, shape index: {}]   ;;  %s1105_s5 = inlined_call_operand.vmem [shape: f32[3,32], index: 5, kind: input, shape index: {}]   ;;  %s1106_s6 = inlined_call_operand.hbm [shape: f32[2,8,32], index: 6, kind: output, shape index: {}]  }
   0x1   :  { %13 = vsyncpa [#allocation3 + $0x1], 0  ;;  %s938_s21 = smov 0   ;;  %s940_s22 = smov 0  }
   0x2   :  { %s942_s23 = smov 0   ;;  %s944_s24 = smov 0  }
   0x3 LB: > { %s959_s25 = sadd.s32 4294967295, %s892_s24   ;;  %s720_s26 = sadd.s32 4294967294, %s892_s24   ;;  %s892_s24 = sphi %s944_s24, %s1112_s24   ;;  %s888_s23 = sphi %s942_s23, %s1111_s23   ;;  %s884_s22 = sphi %s940_s22, %s1110_s22   ;;  %s880_s21 = sphi %s938_s21, %s1109_s21  }
   0x4   : > { %s963_s27 = sadd.s32 1, %s892_s24   ;;  %s162_s28 = sadd.s32 1, %s888_s23 }
   0x5   : > { %s159_s29 = ssub.s32 %s892_s24, %s963_s27  ;;  %p172_p0 = scmp.ne.s32.totalorder %s888_s23, %s884_s22 }
   0x6   : > { %p160_p1 = scmp.eq.s32.totalorder %s159_s29, 0  ;;  %p173_p2 = scmp.eq.s32.totalorder %s959_s25, 1 }
   0x7   : > { %p178_p3 = scmp.ne.s32.totalorder %s884_s22, %s880_s21  ;;  %p179_p4 = scmp.eq.s32.totalorder %s720_s26, 1 }
   0x8   : > { %s974_s30 = scalar_select %p160_p1, %s888_s23, %s162_s28  }
   0x9   : > { %p976_p5 = por %p173_p2, %p172_p0  ;;  %p980_p6 = por %p179_p4, %p178_p3 }
   0xa   : > { %p723_p7 = scmp.ge.s32.totalorder %s892_s24, 1  ;;  %p222_p8 = scmp.lt.s32.totalorder %s892_s24, 3 }
   0xc   : > { %p223_p9 = pnand %p723_p7, %p222_p8 }
   0xd   : > { %p254_p10 = scmp.lt.s32.totalorder (!%p223_p9), %s959_s25, 1  ;;  %s894_s20 = smov (!%p223_p9), 104  }
   0xe   : > { %226 = sbr.rel (%p223_p9) target bundleno = 1441 (0x5a1), region = 44  ;;  %s895_s26 = smov (!%p223_p9), 120  }
   0xf   : > { %s896_s28 = smov (!%p223_p9), 112   ;;  %s897_s29 = smov (!%p223_p9), 96  }
  0x10   : > { %s899_s15 = smov (!%p223_p9), 16   ;;  %s900_s16 = smov (!%p223_p9), 8  }
  0x11   : > { %s251_s9 = sand.u32 (!%p223_p9), 1, %s884_s22  }
  0x12   : > { %s724_s10 = sshll.u32 (!%p223_p9), %s251_s9, 3 }
  0x13   : > { %v757_v0 = vld [vmem:[%s1102_s2 + $0x8] sm:$0xff]  ;;  %v756_v1 = vld [vmem:[%s1102_s2] sm:$0xff]  ;;  %s994_s13 = scalar_select %p254_p10, %s959_s25, 1  ;;  %vm284_vm0 = vcmask 261120   ;;  %vm324_vm1 = vcmask 64512   ;;  %vm469_vm2 = vcmask 1043456  }
  0x14   : > { %294 = vmatpush.bf16.msra.mxu0 %v757_v0  ;;  %v808_v4 = vld [vmem:[%s1103_s3] ss:$0 sm:$0xff]  ;;  %vm562_vm3 = vcmask 130048   ;;  %vm564_vm4 = vcmask 195584  }
  0x15   : > { %s725_s14 = sshll.u32 %s994_s13, 3  ;;  %s260_s11 = scalar_lea.vmem %s1101_s1, %s994_s13 }
  0x16   : > { %s257_s17 = scalar_lea.vmem %s1100_s0, %s725_s14  ;;  %v809_v33 = vld [vmem:[%s260_s11] ss:$0 sm:$0xff]  ;;  %s898_s13 = smov 64  }
  0x17   : > { %v1000_v2 = vld [vmem:[%s257_s17] sm:$0xff]  ;;  %s901_s17 = smov 24   ;;  %s753_s11 = sshll.u32 %s959_s25, 3 }
  0x18   : > { %295 = vmatpush.bf16.msra.mxu0 %v756_v1  ;;  %v263_v3 = vpack.c.bf16 %v1000_v2, %v1000_v2  ;;  %s637_s25 = scalar_lea.sflag [#allocation3], %s251_s9 }
  0x1b   : > { %734 = vmatmul.msk.bf16.vlgmr.msra.gmra.mxu0 %vm284_vm0, %v263_v3 }
  0x98   : > { %v297_v5 = vpop.f32.mrf.mxu0 }
  0x99   : > { %v298_v6 = vadd.f32 %v808_v4, %v297_v5 }
  0x9b   : > { %308 = vrot.lane.b32.xlu1 %v298_v6, %s894_s20  ;;  %302 = vrot.lane.b32.xlu0 %v298_v6, %s895_s26  ;;  %v311_v8 = vpack.c.bf16 %v298_v6, %v298_v6 }
  0x9d   : > { %v320_v9 = vunpack.c.l.b16 %v311_v8 }
  0x9f   : > { %v1008_v10 = vpack.c.b16 %v320_v9, %v320_v9 }
  0xa0   : > { %v299_v7 = vpop.f32.mrf.mxu0 }
  0xa3   : > { %305 = vrot.lane.b32.xlu0 %v298_v6, %s896_s28  ;;  %s850_s28 = scalar_lea.hbm %s1106_s6, 16 }
  0xab   : > { %322 = vrot.lane.b32.xlu0 %v1008_v10, %s897_s29 }
 0x10d   : > { %v303_v11 = vpop.permute.xlu0 %302  ;;  %v309_v17 = vpop.permute.xlu1 %308 }
 0x10e   : > { %v312_v12 = vpack.c.bf16 %v303_v11, %v303_v11  ;;  %v314_v19 = vpack.c.bf16 %v309_v17, %v309_v17 }
 0x110   : > { %v345_v13 = vunpack.c.l.b16 %v312_v12  ;;  %v393_v22 = vunpack.c.l.b16 %v314_v19 }
 0x112   : > { %v1015_v14 = vpack.c.b16 %v345_v13, %v345_v13  ;;  %v394_v24 = vpack.c.b16 %v393_v22, %v393_v22 }
 0x114   : > { %347 = vrot.lane.b32.xlu1 %v1015_v14, %s897_s29 }
 0x115   : > { %v306_v15 = vpop.permute.xlu0 %305 }
 0x116   : > { %v313_v16 = vpack.c.bf16 %v306_v15, %v306_v15 }
 0x118   : > { %v369_v18 = vunpack.c.l.b16 %v313_v16 }
 0x11a   : > { %v1018_v20 = vpack.c.b16 %v369_v18, %v369_v18 }
 0x11c   : > { %371 = vrot.lane.b32.xlu2 %v1018_v20, %s897_s29 }
 0x11d   : > { %v323_v21 = vpop.permute.xlu0 %322 }
 0x11e   : > { %v329_v23 = vsel %vm324_vm1, %v323_v21, 0 }
 0x11f   : > { %338 = vmatpush.bf16.xpose.msra.mxu1 %v329_v23 }
 0x124   : > { %395 = vrot.lane.b32.xlu2 %v394_v24, %s897_s29 }
 0x126   : > { %735 = vmatmul.msk.bf16.vlgmr.msra.gmra.mxu1 %vm324_vm1, %v311_v8 }
 0x176   : > { %v372_v25 = vpop.permute.xlu2 %371 }
 0x177   : > { %v377_v26 = vsel %vm324_vm1, %v372_v25, 0 }
 0x178   : > { %386 = vmatpush.bf16.xpose.msra.mxu3 %v377_v26 }
 0x17e   : > { %v396_v27 = vpop.permute.xlu2 %395 }
 0x17f   : > { %737 = vmatmul.msk.bf16.vlgmr.msra.gmra.mxu3 %vm324_vm1, %v313_v16  ;;  %v401_v28 = vsel %vm324_vm1, %v396_v27, 0 }
 0x180   : > { %410 = vmatpush.bf16.xpose.msrb.mxu0 %v401_v28 }
 0x186   : > { %v348_v29 = vpop.permute.xlu1 %347 }
 0x187   : > { %738 = vmatmul.msk.bf16.vlgmr.msrb.gmra.mxu0 %vm324_vm1, %v314_v19  ;;  %v353_v30 = vsel %vm324_vm1, %v348_v29, 0 }
 0x188   : > { %362 = vmatpush.bf16.xpose.msra.mxu2 %v353_v30 }
 0x18f   : > { %736 = vmatmul.msk.bf16.vlgmr.msra.gmra.mxu2 %vm324_vm1, %v312_v12 }
 0x1a3   : > { %v340_v31 = vpop.f32.mrf.mxu1 }
 0x1a4   : > { %v341_v40 = vadd.f32 %v809_v33, %v340_v31 }
 0x1a6   : > { %v416_v43 = vsel %vm324_vm1, %v341_v40, -inf }
 0x1ab   : > { %v342_v32 = vpop.f32.mrf.mxu1 }
 0x202   : > { %v388_v34 = vpop.f32.mrf.mxu3 }
 0x203   : > { %v389_v35 = vadd.f32 %v809_v33, %v388_v34 }
 0x204   : > { %v412_v36 = vpop.f32.mrf.mxu0 }
 0x205   : > { %v413_v37 = vadd.f32 %v809_v33, %v412_v36  ;;  %v422_v38 = vsel %vm324_vm1, %v389_v35, -inf }
 0x206   : > { %423 = vmax.xlane.f32.xlu2 %v422_v38  ;;  %v758_v38 = vld [vmem:[%s1104_s4] sm:$0xff] }
 0x207   : > { %v425_v39 = vsel %vm324_vm1, %v413_v37, -inf }
 0x208   : > { %426 = vmax.xlane.f32.xlu0 %v425_v39 }
 0x20a   : > { %v390_v41 = vpop.f32.mrf.mxu3 }
 0x20c   : > { %v414_v42 = vpop.f32.mrf.mxu0 }
 0x20e   : > { %417 = vmax.xlane.f32.xlu2 %v416_v43 }
 0x212   : > { %v364_v44 = vpop.f32.mrf.mxu2 }
 0x213   : > { %v365_v45 = vadd.f32 %v809_v33, %v364_v44 }
 0x215   : > { %v419_v46 = vsel %vm324_vm1, %v365_v45, -inf }
 0x216   : > { %420 = vmax.xlane.f32.xlu1 %v419_v46  ;;  %v571_v46 = vld [vmem:[%s1105_s5] sm:$0x7] }
 0x21a   : > { %v366_v47 = vpop.f32.mrf.mxu2 }
 0x21b   : > { %v572_v47 = vperm.slane %v571_v46, 0 }
 0x279   : > { %v424_v48 = vpop.xlane.xlu2 %423 }
 0x27a   : > { %v430_v49 = vsub.f32 %v389_v35, %v424_v48 }
 0x27b   : > { %v427_v50 = vpop.xlane.xlu0 %426 }
 0x27c   : > { %v436_v51 = vmul.f32 1.442695, %v430_v49  ;;  %v431_v52 = vsub.f32 %v413_v37, %v427_v50  ;;  %v759_v37 = vld [vmem:[%s1104_s4 + $0x8] sm:$0xff] }
 0x27e   : > { %810 = vpow2.f32 %v436_v51  ;;  %v438_v53 = vmul.f32 1.442695, %v431_v52 }
 0x280   : > { %812 = vpow2.f32 %v438_v53  ;;  %v902_v53 = vmov 32.0  }
 0x281   : > { %v418_v63 = vpop.xlane.xlu2 %417 }
 0x282   : > { %v428_v0 = vsub.f32 %v341_v40, %v418_v63 }
 0x284   : > { %v811_v54 = vpop.eup %810  ;;  %v432_v1 = vmul.f32 1.442695, %v428_v0 }
 0x285   : > { %v446_v55 = vsel %vm324_vm1, %v811_v54, 0.0 }
 0x286   : > { %v813_v56 = vpop.eup %812  ;;  %447 = vadd.xlane.f32.xlu2 %v446_v55 }
 0x287   : > { %v449_v57 = vsel %vm324_vm1, %v813_v56, 0.0 }
 0x288   : > { %450 = vadd.xlane.f32.xlu0 %v449_v57 }
 0x289   : > { %v421_v58 = vpop.xlane.xlu1 %420 }
 0x28a   : > { %v429_v59 = vsub.f32 %v365_v45, %v421_v58 }
 0x28c   : > { %v434_v60 = vmul.f32 1.442695, %v429_v59 }
 0x28e   : > { %814 = vpow2.f32 %v434_v60 }
 0x28f   : > { %816 = vpow2.f32 %v432_v1 }
 0x294   : > { %v815_v61 = vpop.eup %814 }
 0x295   : > { %v443_v62 = vsel %vm324_vm1, %v815_v61, 0.0  ;;  %v817_v3 = vpop.eup %816 }
 0x296   : > { %444 = vadd.xlane.f32.xlu1 %v443_v62  ;;  %v440_v4 = vsel %vm324_vm1, %v817_v3, 0.0 }
 0x29c   : > { %528 = vrot.lane.b32.xlu0 %v394_v24, %s898_s13 }
 0x29e   : > { %507 = vrot.lane.b32.xlu2 %v1018_v20, %s898_s13 }
 0x2a4   : > { %464 = vrot.lane.b32.xlu0 %v1008_v10, %s898_s13 }
 0x2af   : > { %486 = vrot.lane.b32.xlu1 %v1015_v14, %s898_s13  ;;  %s647_s13 = scalar_lea.hbm %s1106_s6, %s753_s11 }
 0x2d9   : > { %441 = vadd.xlane.f32.xlu1 %v440_v4 }
 0x2f9   : > { %v448_v5 = vpop.xlane.xlu2 %447 }
 0x2fa   : > { %818 = vrcp.f32 %v448_v5 }
 0x2fb   : > { %v451_v8 = vpop.xlane.xlu0 %450 }
 0x2fc   : > { %820 = vrcp.f32 %v451_v8 }
 0x300   : > { %v819_v6 = vpop.eup %818 }
 0x301   : > { %v458_v7 = vmul.f32 %v819_v6, %v811_v54  ;;  %v508_v9 = vpop.permute.xlu2 %507 }
 0x302   : > { %v513_v11 = vsel %vm469_vm2, %v508_v9, 0  ;;  %v821_v12 = vpop.eup %820 }
 0x303   : > { %522 = vmatpush.bf16.msrb.mxu3 %v513_v11  ;;  %v462_v10 = vpack.c.bf16 %v458_v7, %v458_v7  ;;  %v459_v13 = vmul.f32 %v821_v12, %v813_v56  ;;  %v631_v11 = vperm.slane %v571_v46, 1  ;;  %v633_v12 = vperm.slane %v571_v46, 2 }
 0x305   : > { %v463_v16 = vpack.c.bf16 %v459_v13, %v459_v13 }
 0x306   : > { %741 = vmatmul.msk.bf16.vlgmr.msrb.gmra.mxu3 %vm324_vm1, %v462_v10 }
 0x309   : > { %v445_v17 = vpop.xlane.xlu1 %444 }
 0x30a   : > { %822 = vrcp.f32 %v445_v17 }
 0x30e   : > { %v529_v14 = vpop.permute.xlu0 %528 }
 0x30f   : > { %v534_v15 = vsel %vm469_vm2, %v529_v14, 0 }
 0x310   : > { %543 = vmatpush.bf16.msra.mxu0 %v534_v15  ;;  %v823_v20 = vpop.eup %822 }
 0x311   : > { %v457_v21 = vmul.f32 %v823_v20, %v815_v61 }
 0x313   : > { %742 = vmatmul.msk.bf16.vlgmr.msra.gmra.mxu0 %vm324_vm1, %v463_v16  ;;  %v461_v24 = vpack.c.bf16 %v457_v21, %v457_v21 }
 0x316   : > { %v465_v18 = vpop.permute.xlu0 %464 }
 0x317   : > { %v471_v19 = vsel %vm469_vm2, %v465_v18, 0 }
 0x318   : > { %480 = vmatpush.bf16.msrb.mxu1 %v471_v19 }
 0x31c   : > { %594 = vmatpush.bf16.msra.mxu1 %v759_v37 }
 0x320   : > { %595 = vmatpush.bf16.msra.mxu1 %v758_v38 }
 0x321   : > { %v487_v22 = vpop.permute.xlu1 %486 }
 0x322   : > { %v492_v23 = vsel %vm469_vm2, %v487_v22, 0 }
 0x323   : > { %501 = vmatpush.bf16.msrb.mxu2 %v492_v23 }
 0x326   : > { %740 = vmatmul.msk.bf16.vlgmr.msrb.gmra.mxu2 %vm324_vm1, %v461_v24 }
 0x34c   : > { %v442_v25 = vpop.xlane.xlu1 %441 }
 0x34d   : > { %824 = vrcp.f32 %v442_v25 }
 0x34e   : > { %826 = vrcp.f32 %v902_v53 }
 0x353   : > { %v825_v26 = vpop.eup %824 }
 0x354   : > { %v456_v27 = vmul.f32 %v825_v26, %v817_v3  ;;  %v827_v54 = vpop.eup %826 }
 0x355   : > { %v606_v55 = vmul.f32 32.0, %v827_v54  ;;  %vm610_vm5 = vweird.f32 %v827_v54 }
 0x356   : > { %v460_v28 = vpack.c.bf16 %v456_v27, %v456_v27 }
 0x357   : > { %v607_v56 = vsub.f32 1.0, %v606_v55 }
 0x358   : > { %739 = vmatmul.msk.bf16.vlgmr.msrb.gmra.mxu1 %vm324_vm1, %v460_v28 }
 0x359   : > { %v608_v57 = vmul.f32 %v827_v54, %v607_v56 }
 0x35b   : > { %v609_v58 = vadd.f32 %v827_v54, %v608_v57 }
 0x35d   : > { %v611_v59 = vsel %vm610_vm5, %v827_v54, %v609_v58 }
 0x389   : > { %v524_v29 = vpop.f32.mrf.mxu3 }
 0x38a   : > { %554 = vrot.lane.b32.xlu0 %v524_v29, %s899_s15  ;;  %s253_s15 = scalar_lea.vmem [#allocation2], %s724_s10 }
 0x390   : > { %v545_v30 = vpop.f32.mrf.mxu0 }
 0x391   : > { %v526_v31 = vpop.f32.mrf.mxu3 }
 0x398   : > { %v547_v32 = vpop.f32.mrf.mxu0 }
 0x3a9   : > { %v503_v33 = vpop.f32.mrf.mxu2 }
 0x3aa   : > { %550 = vrot.lane.b32.xlu2 %v503_v33, %s900_s16  ;;  %s649_s16 = sshll.u32 %s253_s15, 4  ;;  %s650_s16 = int_to_ptr.vmem [resolvable:$true] %s649_s16 }
 0x3b1   : > { %v505_v34 = vpop.f32.mrf.mxu2 }
 0x3b2   : > { %558 = vrot.lane.b32.xlu2 %v545_v30, %s901_s17  ;;  %s651_s17 = sshll.u32 %s647_s13, 4  ;;  %s652_s17 = int_to_ptr.hbm [resolvable:$true] %s651_s17 }
 0x3b3   : > { %s844_s18 = sshra.s32 %s652_s17, 4  ;;  %s845_s18 = int_to_ptr.hbm [resolvable:$true] %s844_s18 }
 0x3b4   : > { %s846_s19 = scalar_lea.hbm %s845_s18, 8  ;;  %p851_p0 = scmp.lt.s32.totalorder %s845_s18, %s1106_s6 }
 0x3b5   : > { %p847_p11 = scmp.ne.s32.totalorder %s845_s18, %s846_s19  ;;  %p852_p1 = scmp.lt.s32.totalorder %s850_s28, %s846_s19 }
 0x3b7   : > { %p848_p12 = pnand %p847_p11, %p976_p5  ;;  %p853_p2 = por %p852_p1, %p851_p0 }
 0x3b9   : > { %p849_p13 = pneg %p848_p12 }
 0x3bb   : > { %p854_p3 = pnand %p853_p2, %p849_p13 }
 0x3d5   : > { %v482_v35 = vpop.f32.mrf.mxu1 }
 0x3dd   : > { %v484_v36 = vpop.f32.mrf.mxu1 }
 0x3fc   : > { %v555_v41 = vpop.permute.xlu0 %554 }
 0x404   : > { %v551_v39 = vpop.permute.xlu2 %550 }
 0x405   : > { %v561_v40 = vsel %vm324_vm1, %v482_v35, %v551_v39 }
 0x406   : > { %v563_v43 = vsel %vm562_vm3, %v561_v40, %v555_v41 }
 0x40c   : > { %v559_v42 = vpop.permute.xlu2 %558 }
 0x40d   : > { %v565_v44 = vsel %vm564_vm4, %v563_v43, %v559_v42 }
 0x40e   : > { %v566_v45 = vpack.c.bf16 %v565_v44, %v565_v44 }
 0x410   : > { %751 = vmatmul.msk.bf16.vlgmr.msra.gmra.mxu1 %vm284_vm0, %v566_v45 }
 0x48d   : > { %v597_v48 = vpop.f32.mrf.mxu1 }
 0x48e   : > { %v598_v49 = vadd.f32 %v597_v48, %v572_v47 }
 0x490   : > { %v601_v50 = vadd.f32 %v598_v49, %v1000_v2 }
 0x492   : > { %v602_v51 = vsel %vm284_vm0, %v601_v50, 0.0 }
 0x493   : > { %603 = vadd.xlane.f32.xlu0 %v602_v51 }
 0x495   : > { %v599_v52 = vpop.f32.mrf.mxu1 }
 0x506   : > { %v604_v60 = vpop.xlane.xlu0 %603 }
 0x507   : > { %v612_v61 = vmul.f32 %v611_v59, %v604_v60 }
 0x509   : > { %v613_v62 = vsub.f32 %v601_v50, %v612_v61 }
 0x50b   : > { %v614_v63 = vmul.f32 %v613_v62, %v613_v62 }
 0x50d   : > { %v615_v2 = vsel %vm284_vm0, %v614_v63, 0.0 }
 0x50e   : > { %616 = vadd.xlane.f32.xlu2 %v615_v2 }
 0x581   : > { %v617_v0 = vpop.xlane.xlu2 %616 }
 0x582   : > { %v618_v1 = vmul.f32 %v617_v0, %v611_v59 }
 0x584   : > { %v619_v3 = vadd.f32 1e-12, %v618_v1 }
 0x586   : > { %828 = vrsqrt.f32 %v619_v3  ;;  %vm626_vm7 = vweird.f32 %v619_v3 }
 0x58c   : > { %v829_v4 = vpop.eup %828 }
 0x58d   : > { %v621_v5 = vmul.f32 %v829_v4, %v619_v3  ;;  %vm627_vm6 = vweird.f32 %v829_v4 }
 0x58e   : > { %vm628_vm8 = vmor %vm626_vm7, %vm627_vm6 }
 0x58f   : > { %v622_v6 = vmul.f32 %v829_v4, %v621_v5 }
 0x591   : > { %v623_v7 = vmul.f32 0.5, %v622_v6 }
 0x593   : > { %v624_v8 = vsub.f32 1.5, %v623_v7 }
 0x595   : > { %v625_v9 = vmul.f32 %v829_v4, %v624_v8 }
 0x597   : > { %v629_v10 = vsel %vm628_vm8, %v829_v4, %v625_v9 }
 0x598   : > { %v630_v13 = vmul.f32 %v629_v10, %v613_v62 }
 0x59a   : > { %v632_v14 = vmul.f32 %v631_v11, %v630_v13 }
 0x59c   : > { %v634_v15 = vadd.f32 %v633_v12, %v632_v14 }
 0x59e   : > { %635 = vst.msk [vmem:[%s253_s15] sm:$0xff] %vm284_vm0, %v634_v15 }
 0x59f   : > { %857 = shalt.err (!%p854_p3)
}
 0x5a0   : > { %760 = dma.vmem_to_hbm [thread:$0]  (%p976_p5), %s650_s16, 128, %s652_s17, %s637_s25  }
 0x5a1 PF: > { %p766_p4 = scmp.ge.s32.totalorder %s892_s24, 2  ;;  %s663_s9 = sand.u32 1, %s880_s21  }
 0x5a2   : > { %s664_s11 = scalar_lea.sflag [#allocation3], %s663_s9 }
 0x5a3   : > { %p763_p7 = pnand %p766_p4, %p980_p6 }
 0x5a5   : > { %p764_p8 = pneg %p763_p7 }
 0x5a7   : > { %875 = dma.done.wait (%p764_p8), %s664_s11, 128  }
 0x5a8   : > { %877 = vsyncadd (%p764_p8), %s664_s11, 4294967168  ;;  %p16_p9 = scmp.ge.s32.totalorder %s963_s27, 4   ;;  %s1109_s21 = smov %s884_s22 }
 0x5a9   : > { %s1110_s22 = smov %s888_s23  ;;  %s1111_s23 = smov %s974_s30 }
 0x5aa   : > { %s1112_s24 = smov %s963_s27  ;;  %18 = sbr.rel (!%p16_p9) target bundleno = 3 (0x3), region = 82 }
 0x5af   :  { %670 = vsyncpa [#allocation3], 1 }
 0x5b0   :  { %672 = vsyncpa [#allocation3 + $0x1], 1 }

</bundles_post_ra>
